<compile_context>
chip_gen: v5e
topology: v5e:2x2
jax: 0.10.0
libtpu: 0.0.40
codegen_flags: <defaults>
</compile_context>

<pallas_src>
import jax
import jax.numpy as jnp
from jax.experimental import pallas as pl
from jax.experimental.pallas import tpu as pltpu


# ----------------------------------------------------------------------------
# Kernel 1: spectral projection (reduction over node tiles) + diffusion coefs.
#   spec^T[c,k] = sum_n x[n,c] * evecs[n,k], then *= exp(-evals[k]*time[c])
# ----------------------------------------------------------------------------
def _spectral_proj_kernel(xt_ref, ev_ref, et_ref, spec_ref):
    i = pl.program_id(0)

    @pl.when(i == 0)
    def _init():
        spec_ref[...] = jnp.zeros_like(spec_ref)

    # [C, TILE] @ [TILE, K] -> [C, K], bf16 operands, f32 accumulate.
    spec_ref[...] += jnp.dot(xt_ref[...], ev_ref[...],
                             preferred_element_type=jnp.float32)

    @pl.when(i == pl.num_programs(0) - 1)
    def _finalize():
        # diffusion coefficients: exp(-evals * time) (transposed layout [C, K])
        spec_ref[...] = jnp.exp(-et_ref[...]) * spec_ref[...]


# ----------------------------------------------------------------------------
# Kernel 2: fused back-projection + aggregation against the streamed A tile.
# The GCN weight is already folded into the spectrum (wspec = W @ spec), so the
# per-step chain is only two MXU matmuls:
#   xw^T[:, k_tile]  = wspec^T @ evecs^T[:, k_tile]          [C,K]@[K,tk]
#   out^T[:, i_tile] += xw^T[:, k_tile] @ aggT[k_tile, i_tile] [C,tk]@[tk,ti]
# on last k: out = relu(out + bias)
# ----------------------------------------------------------------------------
def _diffuse_gcn_kernel(wspec_ref, evt_ref, aggt_ref, b_ref, out_ref):
    k = pl.program_id(1)

    @pl.when(k == 0)
    def _init():
        out_ref[...] = jnp.zeros_like(out_ref)

    xw_t = jnp.dot(wspec_ref[...], evt_ref[...],
                   preferred_element_type=jnp.float32)
    out_ref[...] += jnp.dot(xw_t.astype(jnp.bfloat16), aggt_ref[...],
                            preferred_element_type=jnp.float32)

    @pl.when(k == pl.num_programs(1) - 1)
    def _finalize():
        # dropout(training=False) == identity; bias + ReLU (idempotent double relu)
        # NOTE: padded output columns (i >= N) hold relu(bias); the wrapper
        # slices them off before returning.
        out_ref[...] = jnp.maximum(out_ref[...] + b_ref[...], 0.0)


# ----------------------------------------------------------------------------
# Wrapper
# ----------------------------------------------------------------------------
def time_derivative_diffusion(x, edge_index, l_indices, l_values, mass, evals,
                              evecs, diffusion_time, gcn_weight_oc_ic, gcn_bias,
                              *, tile_i=2048, tile_k=1024, tile_p1=8192):
    """Forward pass of Time_derivative_diffusion (method='spectral', eval mode).

    gcn_weight_oc_ic is in PyG GCNConv.lin.weight orientation [C_out, C_in].
    `edge_index` and `mass` are accepted for signature parity but unused by the
    spectral branch (exactly as in the PyTorch module).

    Tile guidance (per-generation):
      * v7x (64 MiB VMEM/core): keep tile_k*tile_i <= ~2048*2048 so the
        double-buffered bf16 aggT tile stays <= 16 MiB.
      * v5e/v6e (128 MiB VMEM): tiles up to ~2048x4096 are fine; gains past
        1024-2048 are diminishing (HBM roofline ~86% already).
    """
    del edge_index, mass  # unused by the spectral path (matches PyTorch spec)

    N, C = x.shape
    K = evecs.shape[1]
    assert evecs.shape == (N, K)
    assert evals.shape == (K,)
    assert diffusion_time.shape == (C,)
    assert gcn_weight_oc_ic.shape == (C, C)
    assert gcn_bias.shape == (C,)
    assert tile_i % tile_k == 0, "tile_i must be a multiple of tile_k"

    f32, bf16 = jnp.float32, jnp.bfloat16

    # ----- pass-1 padding (node axis, independent of pass-2 tiles) -----------
    n_tiles_1 = pl.cdiv(N, tile_p1)
    n_pad1 = n_tiles_1 * tile_p1
    pad1 = n_pad1 - N

    # ----- pass-2 padding (node axis appears as both reduction k and output i)
    n_tiles_i = pl.cdiv(N, tile_i)
    n_pad2 = n_tiles_i * tile_i                 # multiple of tile_i and tile_k
    n_tiles_k = n_pad2 // tile_k
    pad2 = n_pad2 - N

    # ---- layout plumbing (plain JAX glue, all tiny next to the A matrix) ----
    # Feature-major, node axis padded, bf16 matmul operands.
    x_t = jnp.pad(x.astype(f32).T, ((0, 0), (0, pad1))).astype(bf16)      # [C, Np1]
    ev1 = jnp.pad(evecs.astype(f32), ((0, pad1), (0, 0))).astype(bf16)    # [Np1, K]
    ev_t = jnp.pad(evecs.astype(f32).T, ((0, 0), (0, pad2))).astype(bf16)  # [K, Np2]
    # Dense aggregation matrix, stored transposed: aggT[src, dst] = L._values()
    # so that h^T = xw^T @ aggT reproduces PyG's out[dst] += w * x[src].
    # TODO(synk): for large N scatter directly into bf16 (or build per-tile) to
    #             avoid the N^2 f32 intermediate; kept f32 here for accuracy.
    agg_t = (jnp.zeros((n_pad2, n_pad2), f32)
             .at[l_indices[0], l_indices[1]].add(l_values.astype(f32))
             ).astype(bf16)                                               # [Np2, Np2]
    b_col = gcn_bias.reshape(C, 1).astype(f32)                            # [C, 1]
    # evals*time product, transposed layout [C, K]; exp stays in-kernel (EUP).
    et_t = (diffusion_time.astype(f32)[:, None] * evals.astype(f32)[None, :])

    cparams_reduce = pltpu.CompilerParams(
        dimension_semantics=("arbitrary",),
        vmem_limit_bytes=32 * 1024 * 1024)
    # aggT double-buffer = 2 * tile_k * tile_i * 2 bytes; leave headroom for
    # evT / out / compiler scratch.  Stays under v7x's 64 MiB at the defaults.
    vmem_main = max(32 * 1024 * 1024, 4 * tile_k * tile_i + 8 * 1024 * 1024)
    cparams_main = pltpu.CompilerParams(
        # i axis first + "parallel" so megacore (v7x: 2 TCs) can split output
        # tiles; reduction axis k last + "arbitrary".
        dimension_semantics=("parallel", "arbitrary"),
        vmem_limit_bytes=vmem_main)

    # ---- pass 1: diffused spectrum  spec^T = exp(-et) * (x^T @ evecs)  [C,K] --
    spec_t = pl.pallas_call(
        _spectral_proj_kernel,
        out_shape=jax.ShapeDtypeStruct((C, K), f32),
        grid_spec=pltpu.PrefetchScalarGridSpec(
            num_scalar_prefetch=0,
            grid=(n_tiles_1,),
            in_specs=[
                pl.BlockSpec((C, tile_p1), lambda i: (0, i)),   # x^T node tile
                pl.BlockSpec((tile_p1, K), lambda i: (i, 0)),   # evecs node tile
                pl.BlockSpec((C, K), lambda i: (0, 0)),         # evals*time
            ],
            out_specs=pl.BlockSpec((C, K), lambda i: (0, 0)),   # resident accumulator
        ),
        compiler_params=cparams_reduce,
    )(x_t, ev1, et_t)

    # ---- fold GCN weight into the spectrum (f32, tiny [C,C]@[C,K]) -----------
    wspec_t = (gcn_weight_oc_ic.astype(f32) @ spec_t).astype(bf16)        # [C, K]

    # ---- pass 2: back-projection + streamed-A aggregation --------------------
    # (pl.Buffered(3) on the aggT spec is an option if profiling shows exposed
    #  DMA; the kernel is HBM-bound and default double-buffering already hides
    #  the tiny MXU work, so it is left at the default.)
    out_t = pl.pallas_call(
        _diffuse_gcn_kernel,
        out_shape=jax.ShapeDtypeStruct((C, n_pad2), f32),
        grid_spec=pltpu.PrefetchScalarGridSpec(
            num_scalar_prefetch=0,
            grid=(n_tiles_i, n_tiles_k),                            # (out i, reduce k)
            in_specs=[
                pl.BlockSpec((C, K), lambda i, k: (0, 0)),          # W @ diffused spectrum
                pl.BlockSpec((K, tile_k), lambda i, k: (0, k)),     # evecs^T tile k
                pl.BlockSpec((tile_k, tile_i), lambda i, k: (k, i)),  # aggT tile (streamed)
                pl.BlockSpec((C, 1), lambda i, k: (0, 0)),          # bias column
            ],
            out_specs=pl.BlockSpec((C, tile_i), lambda i, k: (0, i)),
        ),
        compiler_params=cparams_main,
    )(wspec_t, ev_t, agg_t, b_col)

    return out_t[:, :N].T                                           # [N, C]


# ----------------------------------------------------------------------------
# Pure-JAX f32 reference (PyTorch semantics)
# ----------------------------------------------------------------------------
def _reference(x, l_indices, l_values, evals, evecs, diffusion_time,
               w_oc_ic, b):
    N, C = x.shape
    # PyG aggregation: out[dst] += w * x[src]  for edge (src, dst)
    agg = jnp.zeros((N, N), jnp.float32).at[l_indices[1], l_indices[0]].add(
        l_values.astype(jnp.float32))
    x_spec = evecs.T @ x
    coefs = jnp.exp(-evals[:, None] * diffusion_time[None, :])
    x_diffuse = evecs @ (coefs * x_spec)
    xw = x_diffuse @ w_oc_ic.T
    h = agg @ xw + b[None, :]
    return jnp.maximum(h, 0.0)


if __name__ == "__main__":
    key = jax.random.PRNGKey(0)
    k_x, k_evec, k_eval, k_edge, k_val, k_w, k_b, k_t = jax.random.split(key, 8)

    # Small test shapes (production defaults: tile_i=2048, tile_k=1024,
    # tile_p1=8192).  Small tiles here exercise padding, the pass-1 reduction
    # and the asymmetric pass-2 grid.
    N = 300          # num_nodes (not a tile multiple -> exercises padding)
    K = 16           # number of eigenpairs
    C = 8            # C_inout (C_width of the block)
    E = 1500         # nonzeros in the sparse Laplacian L
    TILE_I = 256
    TILE_K = 128
    TILE_P1 = 128

    x = jax.random.normal(k_x, (N, C), jnp.float32)
    evecs = jax.random.normal(k_evec, (N, K), jnp.float32) / jnp.sqrt(N)
    evals = jnp.abs(jax.random.normal(k_eval, (K,), jnp.float32))
    mass = jnp.ones((N,), jnp.float32)              # unused by the spectral path

    # Sparse Laplacian-like operator L: random indices + values.
    l_indices = jax.random.randint(k_edge, (2, E), 0, N, jnp.int32)
    l_values = jax.random.normal(k_val, (E,), jnp.float32) * 0.5
    edge_index = l_indices                          # unused by the spectral path

    # Parameters. Module init is diffusion_time=0 / bias=0; small nonzero values
    # are used here so the exp / bias paths are actually exercised.
    diffusion_time = 0.1 * jnp.abs(jax.random.normal(k_t, (C,), jnp.float32))
    limit = jnp.sqrt(6.0 / (C + C))                 # glorot
    gcn_weight_oc_ic = jax.random.uniform(k_w, (C, C), jnp.float32, -limit, limit)
    gcn_bias = 0.1 * jax.random.normal(k_b, (C,), jnp.float32)

    out = time_derivative_diffusion(x, edge_index, l_indices, l_values, mass,
                                    evals, evecs, diffusion_time,
                                    gcn_weight_oc_ic, gcn_bias,
                                    tile_i=TILE_I, tile_k=TILE_K,
                                    tile_p1=TILE_P1)
    out = jax.block_until_ready(out)

    ref = _reference(x, l_indices, l_values, evals, evecs, diffusion_time,
                     gcn_weight_oc_ic, gcn_bias)

    assert out.shape == (N, C)
    # bf16 MXU operands + f32 accumulation vs. pure-f32 reference.
    assert jnp.allclose(out, ref, atol=3e-2, rtol=3e-2), (
        float(jnp.max(jnp.abs(out - ref))))

    print("KERNEL_OK")
</pallas_src>

<mosaic_0001>
module attributes {stable_mosaic.version = 11 : i64} {
  func.func @_spectral_proj_kernel(%arg0: i32, %arg1: memref<8x128xbf16, #tpu.memory_space<vmem>>, %arg2: memref<128x16xbf16, #tpu.memory_space<vmem>>, %arg3: memref<8x16xf32, #tpu.memory_space<vmem>>, %arg4: memref<8x16xf32, #tpu.memory_space<vmem>>) attributes {dimension_semantics = [#tpu.dimension_semantics<arbitrary>], iteration_bounds = array<i64: 3>, scalar_prefetch = 0 : i64, scratch_operands = 0 : i64, tpu.core_type = #tpu.core_type<tc>, window_params = [{transform_indices = @transform_0, window_bounds = array<i64: 8, 128>}, {transform_indices = @transform_1, window_bounds = array<i64: 128, 16>}, {pipeline_mode = #tpu.pipeline_mode<synchronous>, transform_indices = @transform_2, window_bounds = array<i64: 8, 16>}, {pipeline_mode = #tpu.pipeline_mode<synchronous>, transform_indices = @transform_3, window_bounds = array<i64: 8, 16>}]} {
    %c0_i32 = arith.constant 0 : i32
    %0 = arith.cmpi eq, %arg0, %c0_i32 : i32
    %1 = arith.extui %0 : i1 to i32
    %c0_i32_0 = arith.constant 0 : i32
    %2 = arith.cmpi ne, %1, %c0_i32_0 : i32
    scf.if %2 {
      %cst_9 = arith.constant 0.000000e+00 : f32
      %12 = vector.broadcast %cst_9 : f32 to vector<8x16xf32>
      %c0_10 = arith.constant 0 : index
      %c0_11 = arith.constant 0 : index
      %13 = vector.load %arg4[%c0_10, %c0_11] : memref<8x16xf32, #tpu.memory_space<vmem>>, vector<8x16xf32>
      tpu.vector_store %arg4[%c0_10, %c0_11], %12 {strides = array<i32>} : memref<8x16xf32, #tpu.memory_space<vmem>>, vector<8x16xf32>,
    } else {
    }
    %c0 = arith.constant 0 : index
    %c0_1 = arith.constant 0 : index
    %3 = vector.load %arg4[%c0, %c0_1] : memref<8x16xf32, #tpu.memory_space<vmem>>, vector<8x16xf32>
    %c0_2 = arith.constant 0 : index
    %c0_3 = arith.constant 0 : index
    %4 = vector.load %arg1[%c0_2, %c0_3] : memref<8x128xbf16, #tpu.memory_space<vmem>>, vector<8x128xbf16>
    %c0_4 = arith.constant 0 : index
    %c0_5 = arith.constant 0 : index
    %5 = vector.load %arg2[%c0_4, %c0_5] : memref<128x16xbf16, #tpu.memory_space<vmem>>, vector<128x16xbf16>
    %cst = arith.constant dense<0.000000e+00> : vector<8x16xf32>
    %6 = tpu.matmul %4, %5, %cst {dimension_numbers = #tpu.dot_dimension_numbers<[1], [0], [0], [1], [0, 0, 1, 1], [], []>} : vector<8x128xbf16>, vector<128x16xbf16>, vector<8x16xf32> -> vector<8x16xf32>
    %7 = arith.addf %3, %6 : vector<8x16xf32>
    %c0_6 = arith.constant 0 : index
    %c0_7 = arith.constant 0 : index
    %8 = vector.load %arg4[%c0_6, %c0_7] : memref<8x16xf32, #tpu.memory_space<vmem>>, vector<8x16xf32>
    tpu.vector_store %arg4[%c0_6, %c0_7], %7 {strides = array<i32>} : memref<8x16xf32, #tpu.memory_space<vmem>>, vector<8x16xf32>,
    %c2_i32 = arith.constant 2 : i32
    %9 = arith.cmpi eq, %arg0, %c2_i32 : i32
    %10 = arith.extui %9 : i1 to i32
    %c0_i32_8 = arith.constant 0 : i32
    %11 = arith.cmpi ne, %10, %c0_i32_8 : i32
    scf.if %11 {
      %c0_9 = arith.constant 0 : index
      %c0_10 = arith.constant 0 : index
      %12 = vector.load %arg3[%c0_9, %c0_10] : memref<8x16xf32, #tpu.memory_space<vmem>>, vector<8x16xf32>
      %cst_11 = arith.constant 0.000000e+00 : f32
      %13 = vector.broadcast %cst_11 : f32 to vector<8x16xf32>
      %14 = arith.subf %13, %12 : vector<8x16xf32>
      %15 = math.exp %14 : vector<8x16xf32>
      %c0_12 = arith.constant 0 : index
      %c0_13 = arith.constant 0 : index
      %16 = vector.load %arg4[%c0_12, %c0_13] : memref<8x16xf32, #tpu.memory_space<vmem>>, vector<8x16xf32>
      %17 = arith.mulf %15, %16 : vector<8x16xf32>
      %c0_14 = arith.constant 0 : index
      %c0_15 = arith.constant 0 : index
      %18 = vector.load %arg4[%c0_14, %c0_15] : memref<8x16xf32, #tpu.memory_space<vmem>>, vector<8x16xf32>
      tpu.vector_store %arg4[%c0_14, %c0_15], %17 {strides = array<i32>} : memref<8x16xf32, #tpu.memory_space<vmem>>, vector<8x16xf32>,
    } else {
    }
    return
  }
  func.func @transform_0(%arg0: i32) -> (i32, i32) {
    %c0_i32 = arith.constant 0 : i32
    %c0_i32_0 = arith.constant 0 : i32
    return %c0_i32, %arg0 : i32, i32
  }
  func.func @transform_1(%arg0: i32) -> (i32, i32) {
    %c0_i32 = arith.constant 0 : i32
    %c0_i32_0 = arith.constant 0 : i32
    return %arg0, %c0_i32 : i32, i32
  }
  func.func @transform_2(%arg0: i32) -> (i32, i32) {
    %c0_i32 = arith.constant 0 : i32
    %c0_i32_0 = arith.constant 0 : i32
    %c0_i32_1 = arith.constant 0 : i32
    return %c0_i32, %c0_i32_0 : i32, i32
  }
  func.func @transform_3(%arg0: i32) -> (i32, i32) {
    %c0_i32 = arith.constant 0 : i32
    %c0_i32_0 = arith.constant 0 : i32
    %c0_i32_1 = arith.constant 0 : i32
    return %c0_i32, %c0_i32_0 : i32, i32
  }
}

</mosaic_0001>

<bundles_post_ra>
// kernel: tpu_custom_call.1
= control target key start
LH: loop header
LB: loop body
LE: loop exit
PB: predicated region body
PF: predicated region fallthrough
CT: control target
= control target key end

     0   :  { %8 = vsyncpa [#allocation3], 0  ;;  %s468_s12 = smov 0   ;;  %s499_s0 = inlined_call_operand.vmem [shape: bf16[8,384], index: 0, kind: input, shape index: {}]   ;;  %s500_s1 = inlined_call_operand.vmem [shape: bf16[384,16], index: 1, kind: input, shape index: {}]   ;;  %s501_s2 = inlined_call_operand.vmem [shape: f32[8,16], index: 2, kind: input, shape index: {}]   ;;  %s502_s3 = inlined_call_operand.hbm [shape: f32[8,16], index: 3, kind: output, shape index: {}]  }
   0x1 LB: > { %s474_s13 = sadd.s32 4294967295, %s444_s12   ;;  %p338_p0 = scmp.ge.s32.totalorder %s444_s12, 1  ;;  %s444_s12 = sphi %s468_s12, %s14_s12  }
   0x2   : > { %p143_p1 = scmp.lt.s32.totalorder %s444_s12, 4 }
   0x4   : > { %p144_p2 = pnand %p338_p0, %p143_p1 }
   0x5   : > { %p166_p3 = scmp.lt.s32.totalorder (!%p144_p2), %s474_s13, 2  ;;  %s340_s14 = sshll.u32 (!%p144_p2), %s474_s13, 4 }
   0x6   : > { %147 = sbr.rel (%p144_p2) target bundleno = 205 (0xcd), region = 32  ;;  %p171_p4 = scmp.lt.s32.totalorder (!%p144_p2), %s340_s14, 47 }
   0x7   : > { %p342_p5 = scmp.ne.s32.totalorder (!%p144_p2), %s474_s13, 0 }
   0xb   : > { %s167_s15 = scalar_select %p166_p3, %s474_s13, 2 }
   0xc   : > { %s504_s14 = smov (!%p171_p4, %s340_s14), 47  ;;  %179 = sbr.rel (%p342_p5) target bundleno = 19 (0x13), region = 36 }
   0xd   : > { %s339_s16 = sshll.u32 %s167_s15, 2  ;;  %s341_s20 = sshll.u32 %s504_s14, 2 }
   0xe   : > { %s169_s19 = scalar_lea.vmem %s499_s0, %s339_s16  ;;  %s174_s23 = scalar_lea.vmem %s500_s1, %s341_s20 }
  0x11   : > { %vm180_vm0 = vcmask 130048   ;;  %v446_v0 = vmov 0.0  }
  0x12   : > { %181 = vst.msk [vmem:[#allocation2] sm:$0xff] %vm180_vm0, %v446_v0 }
  0x13 PF: > { %v387_v1 = vld [vmem:[%s174_s23 + $0x38] sm:$0xff]  ;;  %v386_v2 = vld [vmem:[%s174_s23 + $0x30] sm:$0xff]  ;;  %v385_v3 = vld [vmem:[%s174_s23 + $0x28] sm:$0xff]  ;;  %vm262_vm1 = vcmask 130048   ;;  %p375_p6 = scmp.ne.s32.totalorder %s474_s13, 2 }
  0x14   : > { %248 = vmatpush.bf16.msra.mxu0 %v387_v1  ;;  %v384_v4 = vld [vmem:[%s174_s23 + $0x20] sm:$0xff]  ;;  %v383_v5 = vld [vmem:[%s174_s23 + $0x18] sm:$0xff]  ;;  %v382_v6 = vld [vmem:[%s174_s23 + $0x10] sm:$0xff] }
  0x15   : > { %v381_v7 = vld [vmem:[%s174_s23 + $0x8] sm:$0xff]  ;;  %v380_v8 = vld [vmem:[%s174_s23] sm:$0xff] }
  0x16   : > { %v183_v9 = vld [vmem:[%s169_s19] sm:$0xf] }
  0x18   : > { %249 = vmatpush.bf16.msra.mxu0 %v386_v2 }
  0x19   : > { %v182_v10 = vld [vmem:[#allocation2] sm:$0xff] }
  0x1c   : > { %250 = vmatpush.bf16.msra.mxu0 %v385_v3 }
  0x20   : > { %251 = vmatpush.bf16.msra.mxu0 %v384_v4 }
  0x24   : > { %252 = vmatpush.bf16.msra.mxu0 %v383_v5 }
  0x28   : > { %253 = vmatpush.bf16.msra.mxu0 %v382_v6 }
  0x2c   : > { %254 = vmatpush.bf16.msra.mxu0 %v381_v7 }
  0x30   : > { %255 = vmatpush.bf16.msra.mxu0 %v380_v8 }
  0x33   : > { %256 = vmatmul.bf16.vlgmr.msra.gmra.mxu0 %v183_v9 }
  0xb0   : > { %v257_v11 = vpop.f32.mrf.mxu0 }
  0xb1   : > { %v261_v12 = vadd.f32 %v257_v11, %v182_v10 }
  0xb3   : > { %263 = vst.msk [vmem:[#allocation2] sm:$0xff] %vm262_vm1, %v261_v12 }
  0xb4   : > { %267 = sbr.rel (%p375_p6) target bundleno = 200 (0xc8), region = 40 }
  0xb8   : > { %v259_v13 = vpop.f32.mrf.mxu0 }
  0xb9   : > { %v268_v14 = vld [vmem:[%s501_s2] sm:$0xff] }
  0xba   : > { %v269_v15 = vsub.f32 0.0, %v268_v14  ;;  %v272_v17 = vld [vmem:[#allocation2] sm:$0xff] }
  0xbc   : > { %v270_v16 = vmul.f32 1.442695, %v269_v15 }
  0xbe   : > { %404 = vpow2.f32 %v270_v16 }
  0xc4   : > { %v405_v18 = vpop.eup %404 }
  0xc5   : > { %v273_v19 = vmul.f32 %v405_v18, %v272_v17 }
  0xc7   : > { %274 = vst.msk [vmem:[#allocation2] sm:$0xff] %vm262_vm1, %v273_v19 }
  0xc8 PF: > { %p392_p7 = scmp.eq.s32.totalorder %s474_s13, 2  ;;  %s447_s26 = smov [#allocation2]  }
  0xc9   : > { %s281_s27 = sshll.u32 %s447_s26, 4  ;;  %s283_s30 = sshll.u32 %s502_s3, 4  ;;  %s282_s27 = int_to_ptr.vmem [resolvable:$true] %s281_s27  ;;  %s284_s30 = int_to_ptr.hbm [resolvable:$true] %s283_s30 }
  0xca   : > { %389 = dma.vmem_to_hbm [thread:$0]  (%p392_p7), %s282_s27, 128, %s284_s30, [#allocation3]  }
  0xcb   : > { %439 = dma.done.wait (%p392_p7), [#allocation3], 128  }
  0xcc   : > { %441 = vsyncadd (%p392_p7), [#allocation3], 4294967168 }
  0xcd PF: > { %s14_s12 = sadd.s32 1, %s444_s12  }
  0xce   : > { %p11_p8 = scmp.ge.s32.totalorder %s14_s12, 5  }
  0xd0   :  { %13 = sbr.rel (!%p11_p8) target bundleno = 1 (0x1), region = 70 }
  0xd5   :  { %297 = vsyncpa [#allocation3], 1 }
  0xd6   :  { %299 = vsyncpa [#allocation3 + $0x1], 1 }

</bundles_post_ra>
